<compile_context>
chip_gen: v5e
topology: v5e:2x2
jax: 0.10.0
libtpu: 0.0.40
codegen_flags: <defaults>
</compile_context>

<pallas_src>
import jax
import jax.numpy as jnp
from jax import lax
from jax.experimental import pallas as pl
from jax.experimental.pallas import tpu as pltpu


H1, H2 = 30, 20  # hidden sizes from the PyTorch module


def _round_up(n, m):
    return ((n + m - 1) // m) * m


def mlp_kernel(x_ref, w1_ref, b1_ref, w2_ref, b2_ref, w3_ref, b3_ref, o_ref):
    """One batch tile. x tile is [TILE_B, NUM_IN] (native layout); all
    intermediates and the output are [features, TILE_B] (lane-dense)."""
    # Layer 1: contract over the shared feature axis (w1 [H1_P, IN] x [TILE_B, IN])
    # -> [H1_P, TILE_B]; this is the A @ B^T form, no transpose materialized.
    h1 = lax.dot_general(
        w1_ref[...], x_ref[...],
        dimension_numbers=(((1,), (1,)), ((), ())),
        preferred_element_type=jnp.float32)
    h1 = jnp.maximum(h1 + b1_ref[...], 0.0)
    # Layer 2: [H2_P, H1_P] @ [H1_P, TILE_B] + [H2_P, 1] -> ReLU
    h2 = jnp.dot(w2_ref[...], h1, preferred_element_type=jnp.float32)
    h2 = jnp.maximum(h2 + b2_ref[...], 0.0)
    # Layer 3: [OUT_P, H2_P] @ [H2_P, TILE_B] + [OUT_P, 1] (no activation)
    logits = jnp.dot(w3_ref[...], h2, preferred_element_type=jnp.float32)
    o_ref[...] = (logits + b3_ref[...]).astype(o_ref.dtype)


def init_params(key, num_inputs, num_outputs):
    """torch.nn.Linear-style init: W [out,in], b [out], U(-1/sqrt(fan_in), ...)."""
    dims = [(num_inputs, H1), (H1, H2), (H2, num_outputs)]
    keys = jax.random.split(key, 2 * len(dims))
    params = {}
    for i, (fan_in, fan_out) in enumerate(dims):
        bound = 1.0 / float(fan_in) ** 0.5
        params[f"w{i + 1}"] = jax.random.uniform(
            keys[2 * i], (fan_out, fan_in), minval=-bound, maxval=bound,
            dtype=jnp.float32)
        params[f"b{i + 1}"] = jax.random.uniform(
            keys[2 * i + 1], (fan_out,), minval=-bound, maxval=bound,
            dtype=jnp.float32)
    return params


def prepare_params(params):
    """Zero-pad hidden/output (sublane) dims to multiples of 8; biases -> [N,1].

    Layer-1's input dim is left at num_inputs so x can be consumed in its
    native layout (no host-side transpose/pad of the activations)."""
    kp = {}
    prev_out_p = None
    for i in (1, 2, 3):
        w, b = params[f"w{i}"], params[f"b{i}"]
        out_p = _round_up(w.shape[0], 8)
        in_p = w.shape[1] if i == 1 else prev_out_p
        kp[f"w{i}"] = jnp.pad(w, ((0, out_p - w.shape[0]), (0, in_p - w.shape[1])))
        kp[f"b{i}"] = jnp.pad(b, (0, out_p - b.shape[0])).reshape(out_p, 1)
        prev_out_p = out_p
    return kp


def _choose_tile_b(batch):
    # Sweepable cap (review suggested 2048-8192). ~550 B/lane of VMEM footprint
    # -> ~2.2 MiB at 4096, well under v5e's 16 MiB default scoped VMEM.
    cap = 4096
    # Guarantee >= 2 grid steps whenever batch > 128 so the "parallel" batch
    # axis is split across both v7x TensorCores; never below one 128-lane tile.
    half = _round_up(-(-batch // 2), 128)
    return max(128, min(cap, half))


def neural_network_forward(x, kparams, num_outputs):
    """x: [batch, num_inputs] f32 (PyTorch layout). kparams: prepare_params output."""
    batch, num_inputs = x.shape
    out_p = kparams["w3"].shape[0]

    tile_b = _choose_tile_b(batch)
    batch_p = _round_up(batch, tile_b)   # padded output lanes; x is NOT padded

    def const_spec(shape):
        return pl.BlockSpec(shape, lambda i: (0,) * len(shape))

    out_t = pl.pallas_call(
        mlp_kernel,
        out_shape=jax.ShapeDtypeStruct((out_p, batch_p), jnp.float32),
        grid=(batch_p // tile_b,),
        in_specs=[
            # Native x layout; last block may read past `batch` (undefined rows
            # only affect output columns >= batch, which are sliced off below).
            pl.BlockSpec((tile_b, num_inputs), lambda i: (i, 0)),
            const_spec(kparams["w1"].shape),
            const_spec(kparams["b1"].shape),
            const_spec(kparams["w2"].shape),
            const_spec(kparams["b2"].shape),
            const_spec(kparams["w3"].shape),
            const_spec(kparams["b3"].shape),
        ],
        out_specs=pl.BlockSpec((out_p, tile_b), lambda i: (0, i)),
        compiler_params=pltpu.CompilerParams(
            dimension_semantics=("parallel",)),  # v7x: split batch across TCs
    )(x, kparams["w1"], kparams["b1"], kparams["w2"], kparams["b2"],
      kparams["w3"], kparams["b3"])

    # Strip feature/batch padding; return PyTorch layout [batch, num_outputs].
    # TODO(synk): downstream consumers that accept [num_outputs, batch] can skip
    # this small un-fused slice+transpose.
    return out_t[:num_outputs, :batch].T


def reference_forward(x, params):
    h1 = jnp.maximum(x @ params["w1"].T + params["b1"], 0.0)
    h2 = jnp.maximum(h1 @ params["w2"].T + params["b2"], 0.0)
    return h2 @ params["w3"].T + params["b3"]


if __name__ == "__main__":
    num_inputs, num_outputs = 30, 3

    key = jax.random.PRNGKey(0)
    kx, kp = jax.random.split(key)
    params = init_params(kp, num_inputs, num_outputs)
    kparams = prepare_params(params)

    # batch=8: single 128-lane tile, exercises the ragged (block > array) path.
    # batch=1000: tile_b=512 -> 2 grid steps (both TCs on v7x), ragged last block.
    for batch in (8, 1000):
        x = jax.random.normal(jax.random.fold_in(kx, batch),
                              (batch, num_inputs), dtype=jnp.float32)
        logits = jax.block_until_ready(
            neural_network_forward(x, kparams, num_outputs))
        ref = reference_forward(x, params)
        assert logits.shape == (batch, num_outputs)
        assert jnp.allclose(logits, ref, atol=2e-4, rtol=2e-4), \
            f"mismatch vs JAX reference at batch={batch}"

    print("KERNEL_OK")
</pallas_src>

<mosaic_0001>
module attributes {stable_mosaic.version = 11 : i64} {
  func.func @mlp_kernel(%arg0: i32, %arg1: memref<128x30xf32, #tpu.memory_space<vmem>>, %arg2: memref<32x30xf32, #tpu.memory_space<vmem>>, %arg3: memref<32x1xf32, #tpu.memory_space<vmem>>, %arg4: memref<24x32xf32, #tpu.memory_space<vmem>>, %arg5: memref<24x1xf32, #tpu.memory_space<vmem>>, %arg6: memref<8x24xf32, #tpu.memory_space<vmem>>, %arg7: memref<8x1xf32, #tpu.memory_space<vmem>>, %arg8: memref<8x128xf32, #tpu.memory_space<vmem>>) attributes {dimension_semantics = [#tpu.dimension_semantics<parallel>], iteration_bounds = array<i64: 1>, scalar_prefetch = 0 : i64, scratch_operands = 0 : i64, tpu.core_type = #tpu.core_type<tc>, window_params = [{transform_indices = @transform_0, window_bounds = array<i64: 128, 30>}, {pipeline_mode = #tpu.pipeline_mode<synchronous>, transform_indices = @transform_1, window_bounds = array<i64: 32, 30>}, {pipeline_mode = #tpu.pipeline_mode<synchronous>, transform_indices = @transform_2, window_bounds = array<i64: 32, 1>}, {pipeline_mode = #tpu.pipeline_mode<synchronous>, transform_indices = @transform_3, window_bounds = array<i64: 24, 32>}, {pipeline_mode = #tpu.pipeline_mode<synchronous>, transform_indices = @transform_4, window_bounds = array<i64: 24, 1>}, {pipeline_mode = #tpu.pipeline_mode<synchronous>, transform_indices = @transform_5, window_bounds = array<i64: 8, 24>}, {pipeline_mode = #tpu.pipeline_mode<synchronous>, transform_indices = @transform_6, window_bounds = array<i64: 8, 1>}, {transform_indices = @transform_7, window_bounds = array<i64: 8, 128>}]} {
    %c0 = arith.constant 0 : index
    %c0_0 = arith.constant 0 : index
    %0 = vector.load %arg2[%c0, %c0_0] : memref<32x30xf32, #tpu.memory_space<vmem>>, vector<32x30xf32>
    %c0_1 = arith.constant 0 : index
    %c0_2 = arith.constant 0 : index
    %1 = vector.load %arg1[%c0_1, %c0_2] : memref<128x30xf32, #tpu.memory_space<vmem>>, vector<128x30xf32>
    %cst = arith.constant dense<0.000000e+00> : vector<32x128xf32>
    %2 = tpu.matmul %0, %1, %cst {dimension_numbers = #tpu.dot_dimension_numbers<[1], [1], [0], [0], [0, 0, 1, 0], [], []>} : vector<32x30xf32>, vector<128x30xf32>, vector<32x128xf32> -> vector<32x128xf32>
    %c0_3 = arith.constant 0 : index
    %c0_4 = arith.constant 0 : index
    %3 = vector.load %arg3[%c0_3, %c0_4] : memref<32x1xf32, #tpu.memory_space<vmem>>, vector<32x1xf32>
    %4 = vector.broadcast %3 : vector<32x1xf32> to vector<32x128xf32>
    %5 = arith.addf %2, %4 : vector<32x128xf32>
    %cst_5 = arith.constant 0.000000e+00 : f32
    %6 = vector.broadcast %cst_5 : f32 to vector<32x128xf32>
    %7 = arith.maximumf %5, %6 : vector<32x128xf32>
    %c0_6 = arith.constant 0 : index
    %c0_7 = arith.constant 0 : index
    %8 = vector.load %arg4[%c0_6, %c0_7] : memref<24x32xf32, #tpu.memory_space<vmem>>, vector<24x32xf32>
    %cst_8 = arith.constant dense<0.000000e+00> : vector<24x128xf32>
    %9 = tpu.matmul %8, %7, %cst_8 {dimension_numbers = #tpu.dot_dimension_numbers<[1], [0], [0], [1], [0, 0, 1, 1], [], []>} : vector<24x32xf32>, vector<32x128xf32>, vector<24x128xf32> -> vector<24x128xf32>
    %c0_9 = arith.constant 0 : index
    %c0_10 = arith.constant 0 : index
    %10 = vector.load %arg5[%c0_9, %c0_10] : memref<24x1xf32, #tpu.memory_space<vmem>>, vector<24x1xf32>
    %11 = vector.broadcast %10 : vector<24x1xf32> to vector<24x128xf32>
    %12 = arith.addf %9, %11 : vector<24x128xf32>
    %cst_11 = arith.constant 0.000000e+00 : f32
    %13 = vector.broadcast %cst_11 : f32 to vector<24x128xf32>
    %14 = arith.maximumf %12, %13 : vector<24x128xf32>
    %c0_12 = arith.constant 0 : index
    %c0_13 = arith.constant 0 : index
    %15 = vector.load %arg6[%c0_12, %c0_13] : memref<8x24xf32, #tpu.memory_space<vmem>>, vector<8x24xf32>
    %cst_14 = arith.constant dense<0.000000e+00> : vector<8x128xf32>
    %16 = tpu.matmul %15, %14, %cst_14 {dimension_numbers = #tpu.dot_dimension_numbers<[1], [0], [0], [1], [0, 0, 1, 1], [], []>} : vector<8x24xf32>, vector<24x128xf32>, vector<8x128xf32> -> vector<8x128xf32>
    %c0_15 = arith.constant 0 : index
    %c0_16 = arith.constant 0 : index
    %17 = vector.load %arg7[%c0_15, %c0_16] : memref<8x1xf32, #tpu.memory_space<vmem>>, vector<8x1xf32>
    %18 = vector.broadcast %17 : vector<8x1xf32> to vector<8x128xf32>
    %19 = arith.addf %16, %18 : vector<8x128xf32>
    %c0_17 = arith.constant 0 : index
    %c0_18 = arith.constant 0 : index
    %20 = vector.load %arg8[%c0_17, %c0_18] : memref<8x128xf32, #tpu.memory_space<vmem>>, vector<8x128xf32>
    tpu.vector_store %arg8[%c0_17, %c0_18], %19 {strides = array<i32>} : memref<8x128xf32, #tpu.memory_space<vmem>>, vector<8x128xf32>,
    return
  }
  func.func @transform_0(%arg0: i32) -> (i32, i32) {
    %c0_i32 = arith.constant 0 : i32
    %c0_i32_0 = arith.constant 0 : i32
    return %arg0, %c0_i32 : i32, i32
  }
  func.func @transform_1(%arg0: i32) -> (i32, i32) {
    %c0_i32 = arith.constant 0 : i32
    %c0_i32_0 = arith.constant 0 : i32
    %c0_i32_1 = arith.constant 0 : i32
    return %c0_i32, %c0_i32_0 : i32, i32
  }
  func.func @transform_2(%arg0: i32) -> (i32, i32) {
    %c0_i32 = arith.constant 0 : i32
    %c0_i32_0 = arith.constant 0 : i32
    %c0_i32_1 = arith.constant 0 : i32
    return %c0_i32, %c0_i32_0 : i32, i32
  }
  func.func @transform_3(%arg0: i32) -> (i32, i32) {
    %c0_i32 = arith.constant 0 : i32
    %c0_i32_0 = arith.constant 0 : i32
    %c0_i32_1 = arith.constant 0 : i32
    return %c0_i32, %c0_i32_0 : i32, i32
  }
  func.func @transform_4(%arg0: i32) -> (i32, i32) {
    %c0_i32 = arith.constant 0 : i32
    %c0_i32_0 = arith.constant 0 : i32
    %c0_i32_1 = arith.constant 0 : i32
    return %c0_i32, %c0_i32_0 : i32, i32
  }
  func.func @transform_5(%arg0: i32) -> (i32, i32) {
    %c0_i32 = arith.constant 0 : i32
    %c0_i32_0 = arith.constant 0 : i32
    %c0_i32_1 = arith.constant 0 : i32
    return %c0_i32, %c0_i32_0 : i32, i32
  }
  func.func @transform_6(%arg0: i32) -> (i32, i32) {
    %c0_i32 = arith.constant 0 : i32
    %c0_i32_0 = arith.constant 0 : i32
    %c0_i32_1 = arith.constant 0 : i32
    return %c0_i32, %c0_i32_0 : i32, i32
  }
  func.func @transform_7(%arg0: i32) -> (i32, i32) {
    %c0_i32 = arith.constant 0 : i32
    %c0_i32_0 = arith.constant 0 : i32
    return %c0_i32, %arg0 : i32, i32
  }
}

</mosaic_0001>

<bundles_post_ra>
// kernel: tpu_custom_call.1
= control target key start
LH: loop header
LB: loop body
LE: loop exit
PB: predicated region body
PF: predicated region fallthrough
CT: control target
= control target key end

     0   :  { %12 = vsyncpa [#allocation3], 0  ;;  %s564_s0 = inlined_call_operand.vmem [shape: f32[8,30], index: 0, kind: input, shape index: {}]   ;;  %s565_s1 = inlined_call_operand.vmem [shape: f32[32,30], index: 1, kind: input, shape index: {}]   ;;  %s566_s2 = inlined_call_operand.vmem [shape: f32[32,1], index: 2, kind: input, shape index: {}]   ;;  %s567_s3 = inlined_call_operand.vmem [shape: f32[24,32], index: 3, kind: input, shape index: {}]   ;;  %s568_s4 = inlined_call_operand.vmem [shape: f32[24,1], index: 4, kind: input, shape index: {}]   ;;  %s569_s5 = inlined_call_operand.hbm [shape: f32[8,24], index: 5, kind: input, shape index: {}]   ;;  %s570_s6 = inlined_call_operand.vmem [shape: f32[8,1], index: 6, kind: input, shape index: {}]   ;;  %s571_s7 = inlined_call_operand.hbm [shape: f32[8,128], index: 7, kind: output, shape index: {}]  }
   0x1   :  { %13 = vsyncpa [#allocation4], 0  ;;  %s29_s26 = sshll.u32 %s569_s5, 4  ;;  %s386_s27 = smov [#allocation2]   ;;  %s30_s26 = int_to_ptr.hbm [resolvable:$true] %s29_s26 }
   0x2   :  { %s31_s28 = sshll.u32 %s386_s27, 4  ;;  %s32_s28 = int_to_ptr.vmem [resolvable:$true] %s31_s28 }
   0x3   :  { %34 = dma.hbm_to_vmem [thread:$0]  %s30_s26, 128, %s32_s28, [#allocation3]  }
   0x4   :  { %382 = dma.done.wait [#allocation3], 128  }
   0x5   :  { %383 = vsyncadd [#allocation3], 4294967168  ;;  %vm85_vm0 = vcmask 244736   ;;  %v60_v0 = vld [vmem:[%s564_s0 + $0x78] sm:$0xff]  ;;  %v59_v1 = vld [vmem:[%s564_s0 + $0x70] sm:$0xff]  ;;  %v387_v14 = vmov 0  }
   0x6   :  { %312 = vmatpush.xpose.msk.msra.mxu3 %vm85_vm0, %v60_v0  ;;  %288 = vmatpush.xpose.msk.msra.mxu0 %vm85_vm0, %v60_v0  ;;  %v58_v2 = vld [vmem:[%s564_s0 + $0x68] sm:$0xff]  ;;  %v57_v3 = vld [vmem:[%s564_s0 + $0x60] sm:$0xff]  ;;  %v56_v4 = vld [vmem:[%s564_s0 + $0x58] sm:$0xff]  ;;  %vm200_vm1 = vcmask 261120   ;;  %vm246_vm2 = vcmask 195584   ;;  %s278_s17 = sshll.u32 %s571_s7, 4  ;;  %s279_s17 = int_to_ptr.hbm [resolvable:$true] %s278_s17 }
   0x7   :  { %v55_v5 = vld [vmem:[%s564_s0 + $0x50] sm:$0xff]  ;;  %v54_v6 = vld [vmem:[%s564_s0 + $0x48] sm:$0xff]  ;;  %v53_v7 = vld [vmem:[%s564_s0 + $0x40] sm:$0xff]  ;;  %331 = vset.pattern.permute.xlu0 %v387_v14  ;;  %332 = vset.pattern.permute.xlu1 %v387_v14 }
   0x8   :  { %v52_v8 = vld [vmem:[%s564_s0 + $0x38] sm:$0xff]  ;;  %v51_v9 = vld [vmem:[%s564_s0 + $0x30] sm:$0xff]  ;;  %v50_v10 = vld [vmem:[%s564_s0 + $0x28] sm:$0xff]  ;;  %333 = vset.pattern.permute.xlu2 %v387_v14 }
   0x9   :  { %v64_v11 = vld [vmem:[%s566_s2 + $0x18] sm:$0xff]  ;;  %v62_v12 = vld [vmem:[%s566_s2 + $0x8] sm:$0xff]  ;;  %v49_v13 = vld [vmem:[%s564_s0 + $0x20] sm:$0xff] }
   0xa   :  { %313 = vmatpush.xpose.msk.msra.mxu3 %vm85_vm0, %v59_v1  ;;  %289 = vmatpush.xpose.msk.msra.mxu0 %vm85_vm0, %v59_v1  ;;  %v48_v15 = vld [vmem:[%s564_s0 + $0x18] sm:$0xff]  ;;  %v63_v16 = vld [vmem:[%s566_s2 + $0x10] sm:$0xff]  ;;  %v61_v17 = vld [vmem:[%s566_s2] sm:$0xff] }
   0xb   :  { %82 = vperm.xlu0 %331, %v64_v11   ;;  %72 = vperm.xlu1 %332, %v62_v12   ;;  %v47_v18 = vld [vmem:[%s564_s0 + $0x10] sm:$0xff]  ;;  %v46_v19 = vld [vmem:[%s564_s0 + $0x8] sm:$0xff]  ;;  %v182_v20 = vld [vmem:[%s568_s4] sm:$0xff] }
   0xc   :  { %v240_v21 = vld [vmem:[%s570_s6] sm:$0xff]  ;;  %v42_v23 = vld [vmem:[%s565_s1 + $0x8] sm:$0xff]  ;;  %v43_v25 = vld [vmem:[%s565_s1 + $0x10] sm:$0xff] }
   0xd   :  { %v45_v22 = vld [vmem:[%s564_s0] sm:$0xff]  ;;  %v44_v26 = vld [vmem:[%s565_s1 + $0x18] sm:$0xff]  ;;  %v184_v31 = vld [vmem:[%s568_s4 + $0x10] sm:$0xff] }
   0xe   :  { %314 = vmatpush.xpose.msk.msra.mxu3 %vm85_vm0, %v58_v2  ;;  %290 = vmatpush.xpose.msk.msra.mxu0 %vm85_vm0, %v58_v2  ;;  %v41_v24 = vld [vmem:[%s565_s1] sm:$0xff]  ;;  %v183_v37 = vld [vmem:[%s568_s4 + $0x8] sm:$0xff]  ;;  %v181_v47 = vld [vmem:[%s567_s3 + $0x10] sm:$0xff] }
   0xf   :  { %197 = vperm.xlu2 %333, %v184_v31   ;;  %v179_v45 = vld [vmem:[%s567_s3] sm:$0xff]  ;;  %v180_v46 = vld [vmem:[%s567_s3 + $0x8] sm:$0xff]  ;;  %s388_s3 = smov [#allocation5]  }
  0x10   :  { %v239_v60 = vld [vmem:[#allocation2] sm:$0xff]  ;;  %s276_s14 = sshll.u32 %s388_s3, 4  ;;  %s277_s14 = int_to_ptr.vmem [resolvable:$true] %s276_s14 }
  0x12   :  { %315 = vmatpush.xpose.msk.msra.mxu3 %vm85_vm0, %v57_v3  ;;  %291 = vmatpush.xpose.msk.msra.mxu0 %vm85_vm0, %v57_v3 }
  0x13   :  { %77 = vperm.xlu0 %331, %v63_v16   ;;  %67 = vperm.xlu1 %332, %v61_v17  }
  0x16   :  { %316 = vmatpush.xpose.msk.msra.mxu3 %vm85_vm0, %v56_v4  ;;  %292 = vmatpush.xpose.msk.msra.mxu0 %vm85_vm0, %v56_v4 }
  0x17   :  { %192 = vperm.xlu2 %333, %v183_v37  }
  0x1a   :  { %317 = vmatpush.xpose.msk.msra.mxu3 %vm85_vm0, %v55_v5  ;;  %293 = vmatpush.xpose.msk.msra.mxu0 %vm85_vm0, %v55_v5 }
  0x1b   :  { %187 = vperm.xlu0 %331, %v182_v20   ;;  %243 = vperm.xlu1 %332, %v240_v21  }
  0x1e   :  { %318 = vmatpush.xpose.msk.msra.mxu3 %vm85_vm0, %v54_v6  ;;  %294 = vmatpush.xpose.msk.msra.mxu0 %vm85_vm0, %v54_v6 }
  0x22   :  { %319 = vmatpush.xpose.msk.msra.mxu3 %vm85_vm0, %v53_v7  ;;  %295 = vmatpush.xpose.msk.msra.mxu0 %vm85_vm0, %v53_v7 }
  0x26   :  { %320 = vmatpush.xpose.msk.msra.mxu3 %vm85_vm0, %v52_v8  ;;  %296 = vmatpush.xpose.msk.msra.mxu0 %vm85_vm0, %v52_v8 }
  0x2a   :  { %321 = vmatpush.xpose.msk.msra.mxu3 %vm85_vm0, %v51_v9  ;;  %297 = vmatpush.xpose.msk.msra.mxu0 %vm85_vm0, %v51_v9 }
  0x2e   :  { %322 = vmatpush.xpose.msk.msra.mxu3 %vm85_vm0, %v50_v10  ;;  %298 = vmatpush.xpose.msk.msra.mxu0 %vm85_vm0, %v50_v10 }
  0x32   :  { %323 = vmatpush.xpose.msk.msra.mxu3 %vm85_vm0, %v49_v13  ;;  %299 = vmatpush.xpose.msk.msra.mxu0 %vm85_vm0, %v49_v13 }
  0x36   :  { %324 = vmatpush.xpose.msk.msra.mxu3 %vm85_vm0, %v48_v15  ;;  %300 = vmatpush.xpose.msk.msra.mxu0 %vm85_vm0, %v48_v15 }
  0x3a   :  { %325 = vmatpush.xpose.msk.msra.mxu3 %vm85_vm0, %v47_v18  ;;  %301 = vmatpush.xpose.msk.msra.mxu0 %vm85_vm0, %v47_v18 }
  0x3e   :  { %326 = vmatpush.xpose.msk.msra.mxu3 %vm85_vm0, %v46_v19  ;;  %302 = vmatpush.xpose.msk.msra.mxu0 %vm85_vm0, %v46_v19 }
  0x42   :  { %327 = vmatpush.xpose.msk.msra.mxu3 %vm85_vm0, %v45_v22  ;;  %303 = vmatpush.xpose.msk.msra.mxu0 %vm85_vm0, %v45_v22 }
  0x45   :  { %305 = vmatmul.msk.f32.vlgmr.msra.gmra.mxu3 %vm85_vm0, %v42_v23  ;;  %304 = vmatmul.msk.f32.vlgmr.msra.gmra.mxu0 %vm85_vm0, %v41_v24 }
  0x4d   :  { %306 = vmatmul.msk.f32.gmra.mxu3 %vm85_vm0, %v43_v25 }
  0x55   :  { %307 = vmatmul.msk.f32.gmra.mxu3 %vm85_vm0, %v44_v26 }
  0x69   :  { %v198_v49 = vpop.permute.xlu2 %197 }
  0x71   :  { %v193_v51 = vpop.permute.xlu2 %192 }
  0x7d   :  { %v83_v28 = vpop.permute.xlu0 %82  ;;  %v73_v30 = vpop.permute.xlu1 %72 }
  0x85   :  { %v78_v32 = vpop.permute.xlu0 %77  ;;  %v68_v40 = vpop.permute.xlu1 %67 }
  0x8d   :  { %v188_v55 = vpop.permute.xlu0 %187  ;;  %v244_v61 = vpop.permute.xlu1 %243 }
  0xc2   :  { %v163_v36 = vpop.f32.mrf.mxu0 }
  0xc3   :  { %v164_v42 = vadd.f32 %v163_v36, %v68_v40 }
  0xc5   :  { %v175_v44 = vmax.f32 %v164_v42, 0.0 }
  0xc8   :  { %v166_v27 = vpop.f32.mrf.mxu3 }
  0xc9   :  { %v167_v38 = vadd.f32 %v166_v27, %v73_v30 }
  0xcb   :  { %v176_v43 = vmax.f32 %v167_v38, 0.0 }
  0xd0   :  { %v169_v29 = vpop.f32.mrf.mxu3 }
  0xd1   :  { %v170_v34 = vadd.f32 %v169_v29, %v78_v32 }
  0xd3   :  { %v177_v41 = vmax.f32 %v170_v34, 0.0 }
  0xd8   :  { %v172_v33 = vpop.f32.mrf.mxu3 }
  0xd9   :  { %v173_v35 = vadd.f32 %v172_v33, %v83_v28 }
  0xdb   :  { %v178_v39 = vmax.f32 %v173_v35, 0.0 }
  0xdd   :  { %222 = vmatpush.msra.mxu1 %v178_v39 }
  0xdf   :  { %223 = vmatpush.msra.mxu1 %v177_v41 }
  0xe1   :  { %224 = vmatpush.msra.mxu1 %v176_v43 }
  0xe3   :  { %225 = vmatpush.msra.mxu1 %v175_v44 }
  0xe4   :  { %308 = vmatmul.msk.f32.vlgmr.msra.gmra.mxu1 %vm200_vm1, %v179_v45 }
  0xec   :  { %309 = vmatmul.msk.f32.gmra.mxu1 %vm200_vm1, %v180_v46 }
  0xf4   :  { %310 = vmatmul.msk.f32.gmra.mxu1 %vm200_vm1, %v181_v47 }
 0x161   :  { %v227_v48 = vpop.f32.mrf.mxu1 }
 0x162   :  { %v228_v56 = vadd.f32 %v227_v48, %v188_v55 }
 0x164   :  { %v236_v59 = vmax.f32 %v228_v56, 0.0 }
 0x169   :  { %v230_v50 = vpop.f32.mrf.mxu1 }
 0x16a   :  { %v231_v53 = vadd.f32 %v230_v50, %v193_v51 }
 0x16c   :  { %v237_v58 = vmax.f32 %v231_v53, 0.0 }
 0x171   :  { %v233_v52 = vpop.f32.mrf.mxu1 }
 0x172   :  { %v234_v54 = vadd.f32 %v233_v52, %v198_v49 }
 0x174   :  { %v238_v57 = vmax.f32 %v234_v54, 0.0 }
 0x176   :  { %263 = vmatpush.msra.mxu2 %v238_v57 }
 0x178   :  { %264 = vmatpush.msra.mxu2 %v237_v58 }
 0x17a   :  { %265 = vmatpush.msra.mxu2 %v236_v59 }
 0x17b   :  { %311 = vmatmul.msk.f32.vlgmr.msra.gmra.mxu2 %vm246_vm2, %v239_v60 }
 0x1fe   :  { %v267_v62 = vpop.f32.mrf.mxu2 }
 0x1ff   :  { %v268_v63 = vadd.f32 %v267_v62, %v244_v61 }
 0x201   :  { %270 = vst [vmem:[#allocation5] sm:$0xff] %v268_v63 }
 0x202   :  { %281 = dma.vmem_to_hbm [thread:$0]  %s277_s14, 128, %s279_s17, [#allocation4]  }
 0x203   :  { %384 = dma.done.wait [#allocation4], 128  }
 0x204   :  { %385 = vsyncadd [#allocation4], 4294967168 }
 0x205   :  { %286 = vsyncpa [#allocation3], 1 }
 0x206   :  { %287 = vsyncpa [#allocation4], 1 }

</bundles_post_ra>
